<compile_context>
chip_gen: v7x
topology: tpu7x:2x2x1
jax: 0.10.0
libtpu: 0.0.40
codegen_flags: <defaults>
</compile_context>

<pallas_src>
import jax
import jax.numpy as jnp
from jax.experimental import pallas as pl
from jax.experimental.pallas import tpu as pltpu

BN_EPS = 1e-5
HIDDEN = 12   # nn.Linear(num_input, 12)
LANE = 128


def expand_kernel(x_ref, wt_ref, params_ref, o_ref):
    """One batch tile: relu(x @ W^T + b) * scale + shift.

    x_ref:      (TILE_B, num_input)
    wt_ref:     (num_input, HIDDEN)   -- resident across grid steps
    params_ref: (3, HIDDEN)           -- rows: [bias, scale, shift], resident
    o_ref:      (TILE_B, HIDDEN)
    """
    x = x_ref[...]
    # Linear on the MXU with f32 accumulation (x may be f32 or bf16).
    y = jnp.dot(x, wt_ref[...], preferred_element_type=jnp.float32)
    bias = params_ref[0:1, :]     # (1, HIDDEN), broadcasts over rows
    scale = params_ref[1:2, :]
    shift = params_ref[2:3, :]
    # bias + ReLU
    y = jnp.maximum(y + bias, 0.0)
    # Folded BatchNorm1d (eval): y * scale + shift ; Dropout eval == identity.
    o_ref[...] = (y * scale + shift).astype(o_ref.dtype)


def _round_up(v, m):
    return ((v + m - 1) // m) * m


def _tpu_vmem_capacity_bytes():
    """Physical VMEM per core; conservative fallback if the query is missing."""
    try:
        info = pltpu.get_tpu_info()
        cap = int(getattr(info, "vmem_capacity_bytes"))
        if cap > 0:
            return cap
    except Exception:
        pass
    return 64 * 1024 * 1024   # v7x-sized conservative default


def _pick_tile_b(B, num_input, x_itemsize, vmem_budget_bytes,
                 target_x_bytes_per_step):
    """Choose the batch tile.

    Goal: each grid step should read a multi-MiB slab of x (amortize the
    ~0.35 us fixed per-step overhead) while all VMEM buffers -- with their
    128-lane padding and double-buffering -- stay inside vmem_budget_bytes.
    """
    # Per-row VMEM cost (bytes), lane-padded to 128, double-buffered:
    x_row = 2 * _round_up(num_input, LANE) * x_itemsize          # x block
    out_row = 2 * LANE * 4                                        # out block (12 -> 128 lanes, f32)
    # Fixed resident cost: W^T (num_input, 12) padded to 128 lanes (charge x2
    # in case the runtime still double-buffers it) + params (3,12) padded.
    fixed = 2 * _round_up(num_input, 8) * LANE * 4 + 2 * 8 * LANE * 4
    # Leave a little slack for compiler-internal scratch.
    avail = max(0, vmem_budget_bytes - fixed - (2 << 20))

    max_rows_vmem = avail // max(1, (x_row + out_row))
    # Rows needed to hit the raw-x bytes/step target.
    target_rows = max(8, target_x_bytes_per_step // max(1, num_input * x_itemsize))

    rows = min(target_rows, max_rows_vmem, _round_up(B, 8))
    rows = max(8, (rows // 8) * 8)
    return int(rows)


def expand_forward(x, w, b, gamma, beta, running_mean, running_var,
                   x_compute_dtype=jnp.float32):
    """x: (B, num_input); w: (12, num_input); b/gamma/beta/mean/var: (12,)."""
    B, num_input = x.shape
    x = x.astype(x_compute_dtype)
    x_itemsize = jnp.dtype(x_compute_dtype).itemsize

    # Pre-transpose weight so the kernel does a single x @ W_t matmul.
    wt = w.T.astype(x_compute_dtype)                              # (num_input, 12)

    # Fold BatchNorm (eval mode) into an affine scale/shift pair.
    scale = gamma.astype(jnp.float32) * jax.lax.rsqrt(
        running_var.astype(jnp.float32) + BN_EPS)
    shift = beta.astype(jnp.float32) - running_mean.astype(jnp.float32) * scale
    params = jnp.stack(
        [b.astype(jnp.float32), scale, shift], axis=0)            # (3, HIDDEN)

    # Per-generation VMEM policy: use ~3/4 of physical VMEM
    # (v5e/v6e: 128 MiB -> ~96 MiB; v7x: 64 MiB -> ~48 MiB).
    vmem_capacity = _tpu_vmem_capacity_bytes()
    vmem_budget = (vmem_capacity * 3) // 4
    # Target raw-x bytes per grid step; smaller VMEM (v7x) also has faster HBM,
    # so push for bigger steps there (the VMEM cap still bounds it).
    target_x_bytes = 8 * 1024 * 1024 if vmem_capacity <= (64 << 20) else 4 * 1024 * 1024

    tile_b = _pick_tile_b(B, num_input, x_itemsize, vmem_budget, target_x_bytes)
    grid = (pl.cdiv(B, tile_b),)

    cost = pl.CostEstimate(
        flops=2 * B * num_input * HIDDEN,
        transcendentals=0,
        bytes_accessed=(B * num_input * x_itemsize            # x read
                        + num_input * HIDDEN * x_itemsize     # W^T read
                        + 3 * HIDDEN * 4                      # params read
                        + B * HIDDEN * 4),                    # out write
    )

    return pl.pallas_call(
        expand_kernel,
        out_shape=jax.ShapeDtypeStruct((B, HIDDEN), jnp.float32),
        grid_spec=pltpu.PrefetchScalarGridSpec(
            num_scalar_prefetch=0,
            grid=grid,
            in_specs=[
                # x: tiled along batch -> pipelined, double-buffered DMAs.
                pl.BlockSpec((tile_b, num_input), lambda i: (i, 0)),
                # W^T: constant block index -> stays resident in VMEM.
                pl.BlockSpec((num_input, HIDDEN), lambda i: (0, 0)),
                # packed [bias; scale; shift]: single tiny resident block.
                pl.BlockSpec((3, HIDDEN), lambda i: (0, 0)),
            ],
            out_specs=pl.BlockSpec((tile_b, HIDDEN), lambda i: (i, 0)),
        ),
        compiler_params=pltpu.CompilerParams(
            # Batch axis is embarrassingly parallel (megacore sharding where
            # supported; harmless on single-TC v5e/v6e).
            dimension_semantics=("parallel",),
            # Raise the scoped VMEM limit so the overhead-amortizing tiles fit;
            # derived from physical capacity so it is safe on v7x's 64 MiB.
            vmem_limit_bytes=int(vmem_budget),
        ),
        cost_estimate=cost,
    )(x, wt, params)


def reference_forward(x, w, b, gamma, beta, running_mean, running_var):
    y = x @ w.T + b
    y = jnp.maximum(y, 0.0)
    y = gamma * (y - running_mean) / jnp.sqrt(running_var + BN_EPS) + beta
    return y


if __name__ == "__main__":
    key = jax.random.PRNGKey(0)
    num_input = 32

    k_x, k_w, k_b, k_g, k_be, k_m, k_v, k_x2 = jax.random.split(key, 8)

    # Deterministic parameter init (shapes from Expand.__init__).
    bound = 1.0 / jnp.sqrt(num_input)
    w = jax.random.uniform(k_w, (HIDDEN, num_input), jnp.float32, -bound, bound)
    b = jax.random.uniform(k_b, (HIDDEN,), jnp.float32, -bound, bound)
    gamma = 1.0 + 0.1 * jax.random.normal(k_g, (HIDDEN,), jnp.float32)
    beta = 0.1 * jax.random.normal(k_be, (HIDDEN,), jnp.float32)
    running_mean = 0.1 * jax.random.normal(k_m, (HIDDEN,), jnp.float32)
    running_var = 1.0 + 0.1 * jax.random.uniform(k_v, (HIDDEN,), jnp.float32)

    # Smoke test 1: small batch.
    B = 8
    x = jax.random.normal(k_x, (B, num_input), dtype=jnp.float32)
    out = jax.block_until_ready(
        expand_forward(x, w, b, gamma, beta, running_mean, running_var))
    ref = reference_forward(x, w, b, gamma, beta, running_mean, running_var)
    assert out.shape == (B, HIDDEN)
    assert jnp.allclose(out, ref, atol=1e-5, rtol=1e-5), "mismatch vs reference (B=8)"

    # Smoke test 2: batch not a multiple of 8 (exercises masked last block).
    B2 = 13
    x2 = jax.random.normal(k_x2, (B2, num_input), dtype=jnp.float32)
    out2 = jax.block_until_ready(
        expand_forward(x2, w, b, gamma, beta, running_mean, running_var))
    ref2 = reference_forward(x2, w, b, gamma, beta, running_mean, running_var)
    assert out2.shape == (B2, HIDDEN)
    assert jnp.allclose(out2, ref2, atol=1e-5, rtol=1e-5), "mismatch vs reference (B=13)"

    print("KERNEL_OK")
</pallas_src>

<mosaic_0001>
module attributes {stable_mosaic.version = 11 : i64} {
  func.func @expand_kernel(%arg0: i32, %arg1: memref<8x32xf32, #tpu.memory_space<vmem>>, %arg2: memref<32x12xf32, #tpu.memory_space<vmem>>, %arg3: memref<3x12xf32, #tpu.memory_space<vmem>>, %arg4: memref<8x12xf32, #tpu.memory_space<vmem>>) attributes {dimension_semantics = [#tpu.dimension_semantics<parallel>], iteration_bounds = array<i64: 1>, scalar_prefetch = 0 : i64, scratch_operands = 0 : i64, tpu.core_type = #tpu.core_type<tc>, window_params = [{transform_indices = @transform_0, window_bounds = array<i64: 8, 32>}, {pipeline_mode = #tpu.pipeline_mode<synchronous>, transform_indices = @transform_1, window_bounds = array<i64: 32, 12>}, {pipeline_mode = #tpu.pipeline_mode<synchronous>, transform_indices = @transform_2, window_bounds = array<i64: 3, 12>}, {transform_indices = @transform_3, window_bounds = array<i64: 8, 12>}]} {
    %c0 = arith.constant 0 : index
    %c0_0 = arith.constant 0 : index
    %0 = vector.load %arg1[%c0, %c0_0] : memref<8x32xf32, #tpu.memory_space<vmem>>, vector<8x32xf32>
    %c0_1 = arith.constant 0 : index
    %c0_2 = arith.constant 0 : index
    %1 = vector.load %arg2[%c0_1, %c0_2] : memref<32x12xf32, #tpu.memory_space<vmem>>, vector<32x12xf32>
    %cst = arith.constant dense<0.000000e+00> : vector<8x12xf32>
    %2 = tpu.matmul %0, %1, %cst {dimension_numbers = #tpu.dot_dimension_numbers<[1], [0], [0], [1], [0, 0, 1, 1], [], []>} : vector<8x32xf32>, vector<32x12xf32>, vector<8x12xf32> -> vector<8x12xf32>
    %c0_3 = arith.constant 0 : index
    %c0_4 = arith.constant 0 : index
    %3 = vector.load %arg3[%c0_3, %c0_4] : memref<3x12xf32, #tpu.memory_space<vmem>>, vector<1x12xf32>
    %c1 = arith.constant 1 : index
    %c0_5 = arith.constant 0 : index
    %4 = vector.load %arg3[%c1, %c0_5] : memref<3x12xf32, #tpu.memory_space<vmem>>, vector<1x12xf32>
    %c2 = arith.constant 2 : index
    %c0_6 = arith.constant 0 : index
    %5 = vector.load %arg3[%c2, %c0_6] : memref<3x12xf32, #tpu.memory_space<vmem>>, vector<1x12xf32>
    %6 = vector.broadcast %3 : vector<1x12xf32> to vector<8x12xf32>
    %7 = arith.addf %2, %6 : vector<8x12xf32>
    %cst_7 = arith.constant 0.000000e+00 : f32
    %8 = vector.broadcast %cst_7 : f32 to vector<8x12xf32>
    %9 = arith.maximumf %7, %8 : vector<8x12xf32>
    %10 = vector.broadcast %4 : vector<1x12xf32> to vector<8x12xf32>
    %11 = arith.mulf %9, %10 : vector<8x12xf32>
    %12 = vector.broadcast %5 : vector<1x12xf32> to vector<8x12xf32>
    %13 = arith.addf %11, %12 : vector<8x12xf32>
    %c0_8 = arith.constant 0 : index
    %c0_9 = arith.constant 0 : index
    %14 = vector.load %arg4[%c0_8, %c0_9] : memref<8x12xf32, #tpu.memory_space<vmem>>, vector<8x12xf32>
    tpu.vector_store %arg4[%c0_8, %c0_9], %13 {strides = array<i32>} : memref<8x12xf32, #tpu.memory_space<vmem>>, vector<8x12xf32>,
    return
  }
  func.func @transform_0(%arg0: i32) -> (i32, i32) {
    %c0_i32 = arith.constant 0 : i32
    %c0_i32_0 = arith.constant 0 : i32
    return %arg0, %c0_i32 : i32, i32
  }
  func.func @transform_1(%arg0: i32) -> (i32, i32) {
    %c0_i32 = arith.constant 0 : i32
    %c0_i32_0 = arith.constant 0 : i32
    %c0_i32_1 = arith.constant 0 : i32
    return %c0_i32, %c0_i32_0 : i32, i32
  }
  func.func @transform_2(%arg0: i32) -> (i32, i32) {
    %c0_i32 = arith.constant 0 : i32
    %c0_i32_0 = arith.constant 0 : i32
    %c0_i32_1 = arith.constant 0 : i32
    return %c0_i32, %c0_i32_0 : i32, i32
  }
  func.func @transform_3(%arg0: i32) -> (i32, i32) {
    %c0_i32 = arith.constant 0 : i32
    %c0_i32_0 = arith.constant 0 : i32
    return %arg0, %c0_i32 : i32, i32
  }
}

</mosaic_0001>

<bundles_post_ra>
// kernel: tpu_custom_call.1
= control target key start
LH: loop header
LB: loop body
LE: loop exit
PB: predicated region body
PF: predicated region fallthrough
CT: control target
= control target key end

     0   :  { %v182_v3 = vmov 0.0|0.0   ;;  %vm183_vm0 = vmmov 0   ;;  %v184_v6 = vmov 0.0   ;;  %s242_s0 = inlined_call_operand.vmem [shape: f32[8,32], index: 0, kind: input, shape index: {}]   ;;  %s243_s1 = inlined_call_operand.vmem [shape: f32[32,12], index: 1, kind: input, shape index: {}]   ;;  %s244_s2 = inlined_call_operand.vmem [shape: f32[3,12], index: 2, kind: input, shape index: {}]   ;;  %s245_s3 = inlined_call_operand.hbm [shape: f32[8,12], index: 3, kind: output, shape index: {}]  }
   0x1   :  { %v16_v0 = vld [vmem:[%s243_s1] sm:$0xff]  ;;  %v17_v1 = vld [vmem:[%s243_s1 + $0x8] sm:$0xff]  ;;  %v18_v2 = vld [vmem:[%s243_s1 + $0x10] sm:$0xff]  ;;  %148 = vmatprep.subr.bf16.mxu0 %v182_v3  ;;  %145 = vmatprep.mubr.msk.f32.mxu0 %vm183_vm0, %v184_v6 }
   0x2   :  { %v149_v4 = vpack.c.bf16 %v17_v1, %v16_v0  ;;  %v19_v5 = vld [vmem:[%s243_s1 + $0x18] sm:$0xff] }
   0x3   :  { %8 = vsyncpa [#allocation3], 0  ;;  %v152_v7 = vpack.c.bf16 %v19_v5, %v18_v2  ;;  %v15_v8 = vld [vmem:[%s242_s0] sm:$0xff]  ;;  %vm27_vm1 = vcmask 261120   ;;  %s185_s27 = smov [#allocation2]   ;;  %vm112_vm2 = vcmask 97280  }
   0x4   :  { %150 = vmatpush3.bf16.msra.mxu0 %v149_v4  ;;  %v128_v9 = vld [vmem:[%s244_s2] ss:$0 sm:$0xff]  ;;  %v130_v13 = vld [vmem:[%s244_s2 + $0x1] ss:$0 sm:$0xff]  ;;  %v131_v15 = vld [vmem:[%s244_s2 + $0x2] ss:$0 sm:$0xff] }
   0x5   :  { %151 = vmatprep.subr.bf16.mxu0 %v182_v3  ;;  %s120_s0 = sshll.u32 %s185_s27, 4  ;;  %s121_s0 = int_to_ptr.vmem [resolvable:$true] %s120_s0 }
   0x6   :  { %s158_s28 = scalar_lea.vmem %s121_s0, 128  ;;  %p163_p1 = scmp.lt.s32.totalorder %s121_s0, %s121_s0 }
   0x7   :  { %p159_p0 = scmp.ne.s32.totalorder %s121_s0, %s158_s28  ;;  %p164_p2 = scmp.lt.s32.totalorder %s158_s28, %s158_s28 }
   0x8   :  { %153 = vmatpush3.bf16.msra.mxu0 %v152_v7 }
   0x9   :  { %p165_p3 = por %p164_p2, %p163_p1 }
   0xb   :  { %146 = vmatmul.mubr.msk.f32.vlgmr.msra.gmra.mrb[0].mxu0 %vm27_vm1, %v15_v8  ;;  %p166_p4 = pnand %p165_p3, %p159_p0 }
  0xde   :  { %v97_v10 = vpop.f32.mrb[0].mxu0 }
  0xdf   :  { %v98_v11 = vadd.f32 %v128_v9, %v97_v10  ;;  %v147_v12 = vpop.f32.mrb[1].mxu0 }
  0xe1   :  { %v101_v14 = vmax.f32 %v98_v11, 0.0 }
  0xe3   :  { %v106_v16 = vmul.f32 %v130_v13, %v101_v14 }
  0xe5   :  { %v111_v17 = vadd.f32 %v131_v15, %v106_v16 }
  0xe7   :  { %113 = vst.msk [vmem:[#allocation2] sm:$0xff] %vm112_vm2, %v111_v17 }
  0xe8   :  { %169 = shalt.err (!%p166_p4)
}
  0xe9   :  { %s170_s4 = scalar_lea.hbm %s245_s3, 128 }
  0xea   :  { %p171_p5 = scmp.ne.s32.totalorder %s245_s3, %s170_s4  ;;  %p174_p6 = scmp.lt.u32.totalorder %s170_s4, %s245_s3 }
  0xec   :  { %p176_p7 = pnand %p174_p6, %p171_p5 }
  0xee   :  { %179 = shalt.err (!%p176_p7)
}
  0xef   :  { %123 = dma.vmem_to_hbm [thread:$0]  %s121_s0, 128, %s245_s3, [#allocation3]  }
  0xf0   :  { %180 = dma.done.wait [#allocation3], 128  }
  0xf1   :  { %181 = vsyncadd [#allocation3], 4294967168 }
  0xf2   :  { %127 = vsyncpa [#allocation3], 1 }

</bundles_post_ra>
